<compile_context>
chip_gen: v7x
topology: tpu7x:2x2x1
jax: 0.10.0
libtpu: 0.0.40
codegen_flags: <defaults>
</compile_context>

<pallas_src>
import functools
import math

import jax
import jax.numpy as jnp
from jax.experimental import pallas as pl
from jax.experimental.pallas import tpu as pltpu


def _round_up(x, m):
    return ((x + m - 1) // m) * m


def _default_tiles():
    """Per-generation (tile_n, tile_k) defaults (row tile, neighbor-column tile)."""
    try:
        kind = jax.devices()[0].device_kind.lower()
    except Exception:  # pragma: no cover - defensive
        kind = ""
    if "v5" in kind:
        return 256, 1024        # v5e: 128-wide MXU, lowest HBM BW
    if "v6" in kind:
        return 512, 2048        # v6e: 256-wide MXU, 128 MiB VMEM
    if "7" in kind:
        return 512, 1024        # v7x: 64 MiB VMEM/TC, 3.2 TB/s HBM
    return 256, 512             # conservative fallback


def _block_vmem_bytes(shape, itemsize):
    """VMEM bytes of one block including (sublane, lane) = (8, 128) padding."""
    r, c = shape[-2], shape[-1]
    lead = 1
    for d in shape[:-2]:
        lead *= d
    return lead * _round_up(max(r, 1), 8) * _round_up(max(c, 1), 128) * itemsize


def _vmem_limit(bytes_needed):
    """Scoped-VMEM limit: request + headroom, capped safely below the physical
    per-TensorCore capacity (v7x only has 64 MiB/TC)."""
    cap = 48 << 20
    try:
        cap = min(cap, (3 * int(pltpu.get_tpu_info().vmem_capacity_bytes)) // 4)
    except Exception:  # pragma: no cover - older jax / non-TPU backends
        pass
    return int(min(max(bytes_needed + (4 << 20), 16 << 20), cap))


# ---------------------------------------------------------------------------
# Kernel 1: row-tiled projection fused with the attention-vector projections
# and the (hoisted) per-node exponentials.
#   h   = x_rows @ W                       (stored in mxu_dtype, e.g. bf16)
#   s1  = sum(h * a1, -1) ; s2 = sum(h * a2, -1)     (VPU lane reductions)
#   p1p = exp(-s1), p1n = exp(-alpha*s1), p2p = exp(-s2), p2n = exp(-alpha*s2)
# ---------------------------------------------------------------------------
def _proj_kernel(x_ref, w_ref, a1_ref, a2_ref,
                 h_ref, p1p_ref, p1n_ref, p2p_ref, p2n_ref, *, alpha):
    h = jnp.dot(x_ref[...], w_ref[...], preferred_element_type=jnp.float32)
    h_ref[...] = h.astype(h_ref.dtype)
    s1 = jnp.sum(h * a1_ref[...], axis=-1, keepdims=True)
    s2 = jnp.sum(h * a2_ref[...], axis=-1, keepdims=True)
    # O(N) transcendentals here instead of O(N^2) inside the attention loop.
    p1p_ref[...] = jnp.exp(-s1)
    p1n_ref[...] = jnp.exp(-alpha * s1)
    p2p_ref[...] = jnp.exp(-s2)
    p2n_ref[...] = jnp.exp(-alpha * s2)


# ---------------------------------------------------------------------------
# Kernel 2: masked attention aggregation, tiled (rows x neighbor-columns).
# Grid = (num_row_tiles [parallel], num_col_tiles [arbitrary]).
# Per step (i, j):
#   p1p/p1n : (TN, 1)   row factors (constant over j)
#   p2p/p2n : (1,  TK)  column factors
#   adj     : (TN, TK)  int8 adjacency tile
#   h_k     : (TK, F)   neighbor features (mxu_dtype)
#   out     : (TN, F)   written on the last column step
# Scratch: acc (TN, F) f32, rowsum (TN, 1) f32 (flash-style accumulators).
# ---------------------------------------------------------------------------
def _gat_attn_kernel(p1p_ref, p1n_ref, p2p_ref, p2n_ref, adj_ref, hk_ref,
                     out_ref, acc_ref, rsum_ref, *, alpha, concat, mxu_dtype):
    j = pl.program_id(1)

    @pl.when(j == 0)
    def _():
        acc_ref[...] = jnp.zeros_like(acc_ref)
        rsum_ref[...] = jnp.zeros_like(rsum_ref)

    # e_ij = exp(-leakyrelu(s1_i + s2_j)), rebuilt from hoisted per-node factors:
    #   s > 0 branch -> exp(-s1)*exp(-s2);  s <= 0 branch -> exp(-a*s1)*exp(-a*s2)
    e_pos = p1p_ref[...] * p2p_ref[...]            # (TN, TK) broadcast multiply
    e_neg = p1n_ref[...] * p2n_ref[...]
    if 0.0 < alpha < 1.0:
        # For 0 < alpha < 1:  exp(-leakyrelu(s)) == min(exp(-s), exp(-alpha*s)).
        e = jnp.minimum(e_pos, e_neg)
    else:
        e = jnp.where(e_pos < 1.0, e_pos, e_neg)   # e_pos < 1  <=>  s > 0
    e = jnp.where(adj_ref[...] != 0, e, 0.0)       # single masked select

    rsum_ref[...] += jnp.sum(e, axis=1, keepdims=True)
    acc_ref[...] += jnp.dot(e.astype(mxu_dtype), hk_ref[...],
                            preferred_element_type=jnp.float32)

    @pl.when(j == pl.num_programs(1) - 1)
    def _():
        rsum = rsum_ref[...]
        # rowsum == 0  <=>  no edges in the row  =>  output 0 (replaces the
        # div + isnan scrubs of the torch code).  Keep the select: the untaken
        # branch is 0 * inf = NaN for edge-less rows.
        hp = jnp.where(rsum > 0.0,
                       acc_ref[...] * pl.reciprocal(rsum, approx=False), 0.0)
        if concat:
            hp = jnp.where(hp > 0.0, hp, jnp.expm1(hp))     # F.elu
        out_ref[...] = hp.astype(out_ref.dtype)


# ---------------------------------------------------------------------------
# Wrapper
# ---------------------------------------------------------------------------
def sp_gat_forward(x, adj_dense, W, a, *, alpha=0.2, concat=True,
                   tile_n=None, tile_k=None, mxu_dtype=jnp.bfloat16):
    """Forward pass of SpGraphAttentionLayer.

    adj_dense : [N, N] 0/1 mask (any numeric dtype; carried as int8 internally).
    mxu_dtype : bf16 by default (native MXU operand dtype on v5e/v6e/v7x, and
                halves h storage/HBM re-read); pass jnp.float32 for exact math.
    """
    N, Din = x.shape
    Fo = W.shape[1]
    assert a.shape == (1, 2 * Fo)

    dn, dk = _default_tiles()
    tile_n = dn if tile_n is None else tile_n
    tile_k = dk if tile_k is None else tile_k

    # Row tile: multiple of 8, no larger than needed; keep >= 2 row tiles when
    # possible so v7x's two TensorCores (megacore "parallel" axis) both get work.
    tile_n = max(8, min(tile_n, _round_up(N, 8)))
    if N > 8 and _round_up(N, tile_n) // tile_n < 2:
        tile_n = max(8, _round_up((N + 1) // 2, 8))
    # Column tile: multiple of 128, no larger than needed.
    tile_k = max(128, min(tile_k, _round_up(N, 128)))
    tile_k = _round_up(max(tile_k, tile_n), 128)
    # Make tile_n divide tile_k so a single node padding serves both the row
    # and column tilings (no lcm padding blow-up on the N^2 adjacency term).
    if tile_k % tile_n != 0:
        tile_n = max(d for d in range(8, tile_n + 1, 8) if tile_k % d == 0)

    n_rows = _round_up(N, tile_n)   # output / adjacency-row padding
    n_pad = _round_up(N, tile_k)    # node / adjacency-column padding
    # tile_n | tile_k  =>  n_rows <= n_pad and tile_n | n_pad.

    # Padded rows of x are zero (-> h = 0, s = 0, p = 1) and padded adjacency
    # entries are zero, so padded columns contribute nothing; padded output
    # rows have rowsum 0 -> output 0 and are sliced off.
    x_p = jnp.zeros((n_pad, Din), jnp.float32).at[:N, :].set(x.astype(jnp.float32))
    adj_i8 = jnp.zeros((n_rows, n_pad), jnp.int8).at[:N, :N].set(
        adj_dense.astype(jnp.int8))

    a1 = a[:, :Fo].astype(jnp.float32)
    a2 = a[:, Fo:].astype(jnp.float32)
    h_itemsize = jnp.dtype(mxu_dtype).itemsize

    # --- Pass 1: h = x @ W fused with the a-projections and per-node exps ---
    proj_bytes = 2 * (_block_vmem_bytes((tile_n, Din), 4)
                      + _block_vmem_bytes((Din, Fo), 4)
                      + 2 * _block_vmem_bytes((1, Fo), 4)
                      + _block_vmem_bytes((tile_n, Fo), h_itemsize)
                      + 4 * _block_vmem_bytes((tile_n, 1), 4))
    proj = functools.partial(_proj_kernel, alpha=float(alpha))
    h, p1p, p1n, p2p, p2n = pl.pallas_call(
        proj,
        out_shape=(jax.ShapeDtypeStruct((n_pad, Fo), mxu_dtype),
                   jax.ShapeDtypeStruct((n_pad, 1), jnp.float32),
                   jax.ShapeDtypeStruct((n_pad, 1), jnp.float32),
                   jax.ShapeDtypeStruct((n_pad, 1), jnp.float32),
                   jax.ShapeDtypeStruct((n_pad, 1), jnp.float32)),
        grid=(n_pad // tile_n,),
        in_specs=[
            pl.BlockSpec((tile_n, Din), lambda i: (i, 0)),
            pl.BlockSpec((Din, Fo), lambda i: (0, 0)),
            pl.BlockSpec((1, Fo), lambda i: (0, 0)),
            pl.BlockSpec((1, Fo), lambda i: (0, 0)),
        ],
        out_specs=(
            pl.BlockSpec((tile_n, Fo), lambda i: (i, 0)),
            pl.BlockSpec((tile_n, 1), lambda i: (i, 0)),
            pl.BlockSpec((tile_n, 1), lambda i: (i, 0)),
            pl.BlockSpec((tile_n, 1), lambda i: (i, 0)),
            pl.BlockSpec((tile_n, 1), lambda i: (i, 0)),
        ),
        compiler_params=pltpu.CompilerParams(
            dimension_semantics=("parallel",),
            vmem_limit_bytes=_vmem_limit(proj_bytes)),
    )(x_p, W.astype(jnp.float32), a1, a2)

    # Column-oriented views of the neighbor factors.  A column vector's
    # row-major order equals the row vector's, so this reshape is free in XLA.
    p2p_row = p2p.reshape(1, n_pad)
    p2n_row = p2n.reshape(1, n_pad)

    # --- Pass 2: flash-style masked attention aggregation ---
    attn_bytes = (2 * (2 * _block_vmem_bytes((tile_n, 1), 4)      # p1p, p1n
                       + 2 * _block_vmem_bytes((1, tile_k), 4)    # p2p, p2n
                       + _block_vmem_bytes((tile_n, tile_k), 1)   # adj (int8)
                       + _block_vmem_bytes((tile_k, Fo), h_itemsize)  # h cols
                       + _block_vmem_bytes((tile_n, Fo), 4))      # out tile
                  + _block_vmem_bytes((tile_n, Fo), 4)            # acc scratch
                  + _block_vmem_bytes((tile_n, 1), 4))            # rowsum scratch

    kernel = functools.partial(_gat_attn_kernel, alpha=float(alpha),
                               concat=concat, mxu_dtype=mxu_dtype)
    out = pl.pallas_call(
        kernel,
        out_shape=jax.ShapeDtypeStruct((n_rows, Fo), jnp.float32),
        grid=(n_rows // tile_n, n_pad // tile_k),
        in_specs=[
            pl.BlockSpec((tile_n, 1), lambda i, j: (i, 0)),        # p1p rows
            pl.BlockSpec((tile_n, 1), lambda i, j: (i, 0)),        # p1n rows
            pl.BlockSpec((1, tile_k), lambda i, j: (0, j)),        # p2p cols
            pl.BlockSpec((1, tile_k), lambda i, j: (0, j)),        # p2n cols
            pl.BlockSpec((tile_n, tile_k), lambda i, j: (i, j)),   # adjacency tile
            pl.BlockSpec((tile_k, Fo), lambda i, j: (j, 0)),       # h neighbor rows
        ],
        out_specs=pl.BlockSpec((tile_n, Fo), lambda i, j: (i, 0)),
        scratch_shapes=[
            pltpu.VMEM((tile_n, Fo), jnp.float32),   # hp accumulator
            pltpu.VMEM((tile_n, 1), jnp.float32),    # rowsum accumulator
        ],
        compiler_params=pltpu.CompilerParams(
            dimension_semantics=("parallel", "arbitrary"),
            vmem_limit_bytes=_vmem_limit(attn_bytes)),
    )(p1p, p1n, p2p_row, p2n_row, adj_i8, h)

    return out[:N, :]


# ---------------------------------------------------------------------------
# Pure-JAX reference (same math as the torch module, dense-mask formulation)
# ---------------------------------------------------------------------------
def _reference(x, adj_dense, W, a, alpha, concat=True):
    Fo = W.shape[1]
    h = x @ W
    h = jnp.where(jnp.isnan(h), 0.0, h)
    s1 = h @ a[0, :Fo]
    s2 = h @ a[0, Fo:]
    scores = s1[:, None] + s2[None, :]
    lrelu = jnp.where(scores > 0, scores, alpha * scores)
    e = jnp.exp(-lrelu)
    e = jnp.where(jnp.isnan(e), 0.0, e) * adj_dense
    rowsum = e.sum(axis=1, keepdims=True)
    hp = e @ h
    hp = jnp.where(jnp.isnan(hp), 0.0, hp)
    hp = hp / rowsum
    hp = jnp.where(jnp.isnan(hp), 0.0, hp)
    if concat:
        hp = jnp.where(hp > 0, hp, jnp.expm1(hp))
    return hp


if __name__ == "__main__":
    key = jax.random.PRNGKey(0)
    k_w, k_a, k_x, k_adj = jax.random.split(key, 4)

    # Small but tile-friendly shapes: lane-dense Fo=128, N a multiple of 128.
    N, in_features, out_features = 256, 64, 128
    alpha = 0.2

    # xavier_normal_ with gain=1.414 (deterministic, in-script init)
    std_W = 1.414 * math.sqrt(2.0 / (in_features + out_features))
    W = std_W * jax.random.normal(k_w, (in_features, out_features), jnp.float32)
    std_a = 1.414 * math.sqrt(2.0 / (1 + 2 * out_features))
    a = std_a * jax.random.normal(k_a, (1, 2 * out_features), jnp.float32)

    x = jax.random.normal(k_x, (N, in_features), jnp.float32)

    # Random sparse adjacency (dense 0/1 mask) with self-loops.
    adj = (jax.random.uniform(k_adj, (N, N)) < 0.05).astype(jnp.float32)
    adj = jnp.maximum(adj, jnp.eye(N, dtype=jnp.float32))

    ref = _reference(x, adj, W, a, alpha, concat=True)

    # Exact-precision path (f32 MXU operands) -> tight tolerance.
    out_f32 = sp_gat_forward(x, adj, W, a, alpha=alpha, concat=True,
                             mxu_dtype=jnp.float32)
    out_f32 = jax.block_until_ready(out_f32)
    assert out_f32.shape == (N, out_features)
    assert jnp.allclose(out_f32, ref, rtol=1e-3, atol=1e-3), "f32 mismatch vs reference"

    # Default fast path (bf16 MXU operands, bf16 h storage) -> bf16 tolerance.
    out = sp_gat_forward(x, adj, W, a, alpha=alpha, concat=True)
    out = jax.block_until_ready(out)
    assert out.shape == (N, out_features)
    assert jnp.allclose(out, ref, rtol=3e-2, atol=3e-2), "bf16 mismatch vs reference"

    print("KERNEL_OK")
</pallas_src>

<mosaic_0001>
module attributes {stable_mosaic.version = 11 : i64} {
  func.func @_proj_kernel(%arg0: i32, %arg1: memref<128x64xf32, #tpu.memory_space<vmem>>, %arg2: memref<64x128xf32, #tpu.memory_space<vmem>>, %arg3: memref<1x128xf32, #tpu.memory_space<vmem>>, %arg4: memref<1x128xf32, #tpu.memory_space<vmem>>, %arg5: memref<128x128xf32, #tpu.memory_space<vmem>>, %arg6: memref<128x1xf32, #tpu.memory_space<vmem>>, %arg7: memref<128x1xf32, #tpu.memory_space<vmem>>, %arg8: memref<128x1xf32, #tpu.memory_space<vmem>>, %arg9: memref<128x1xf32, #tpu.memory_space<vmem>>) attributes {dimension_semantics = [#tpu.dimension_semantics<parallel>], iteration_bounds = array<i64: 2>, scalar_prefetch = 0 : i64, scratch_operands = 0 : i64, tpu.core_type = #tpu.core_type<tc>, window_params = [{transform_indices = @transform_0, window_bounds = array<i64: 128, 64>}, {pipeline_mode = #tpu.pipeline_mode<synchronous>, transform_indices = @transform_1, window_bounds = array<i64: 64, 128>}, {pipeline_mode = #tpu.pipeline_mode<synchronous>, transform_indices = @transform_2, window_bounds = array<i64: 1, 128>}, {pipeline_mode = #tpu.pipeline_mode<synchronous>, transform_indices = @transform_3, window_bounds = array<i64: 1, 128>}, {transform_indices = @transform_4, window_bounds = array<i64: 128, 128>}, {transform_indices = @transform_5, window_bounds = array<i64: 128, 1>}, {transform_indices = @transform_6, window_bounds = array<i64: 128, 1>}, {transform_indices = @transform_7, window_bounds = array<i64: 128, 1>}, {transform_indices = @transform_8, window_bounds = array<i64: 128, 1>}]} {
    %c0 = arith.constant 0 : index
    %c0_0 = arith.constant 0 : index
    %0 = vector.load %arg1[%c0, %c0_0] : memref<128x64xf32, #tpu.memory_space<vmem>>, vector<128x64xf32>
    %c0_1 = arith.constant 0 : index
    %c0_2 = arith.constant 0 : index
    %1 = vector.load %arg2[%c0_1, %c0_2] : memref<64x128xf32, #tpu.memory_space<vmem>>, vector<64x128xf32>
    %cst = arith.constant dense<0.000000e+00> : vector<128x128xf32>
    %2 = tpu.matmul %0, %1, %cst {dimension_numbers = #tpu.dot_dimension_numbers<[1], [0], [0], [1], [0, 0, 1, 1], [], []>} : vector<128x64xf32>, vector<64x128xf32>, vector<128x128xf32> -> vector<128x128xf32>
    %c0_3 = arith.constant 0 : index
    %c0_4 = arith.constant 0 : index
    %3 = vector.load %arg5[%c0_3, %c0_4] : memref<128x128xf32, #tpu.memory_space<vmem>>, vector<128x128xf32>
    tpu.vector_store %arg5[%c0_3, %c0_4], %2 {strides = array<i32>} : memref<128x128xf32, #tpu.memory_space<vmem>>, vector<128x128xf32>,
    %c0_5 = arith.constant 0 : index
    %c0_6 = arith.constant 0 : index
    %4 = vector.load %arg3[%c0_5, %c0_6] : memref<1x128xf32, #tpu.memory_space<vmem>>, vector<1x128xf32>
    %5 = vector.broadcast %4 : vector<1x128xf32> to vector<128x128xf32>
    %6 = arith.mulf %2, %5 : vector<128x128xf32>
    %cst_7 = arith.constant dense<0.000000e+00> : vector<128xf32>
    %7 = vector.multi_reduction <add>, %6, %cst_7 [1] : vector<128x128xf32> to vector<128xf32>
    %8 = vector.shape_cast %7 : vector<128xf32> to vector<128x1xf32>
    %c0_8 = arith.constant 0 : index
    %c0_9 = arith.constant 0 : index
    %9 = vector.load %arg4[%c0_8, %c0_9] : memref<1x128xf32, #tpu.memory_space<vmem>>, vector<1x128xf32>
    %10 = vector.broadcast %9 : vector<1x128xf32> to vector<128x128xf32>
    %11 = arith.mulf %2, %10 : vector<128x128xf32>
    %cst_10 = arith.constant dense<0.000000e+00> : vector<128xf32>
    %12 = vector.multi_reduction <add>, %11, %cst_10 [1] : vector<128x128xf32> to vector<128xf32>
    %13 = vector.shape_cast %12 : vector<128xf32> to vector<128x1xf32>
    %cst_11 = arith.constant 0.000000e+00 : f32
    %14 = vector.broadcast %cst_11 : f32 to vector<128x1xf32>
    %15 = arith.subf %14, %8 : vector<128x1xf32>
    %16 = math.exp %15 : vector<128x1xf32>
    %c0_12 = arith.constant 0 : index
    %c0_13 = arith.constant 0 : index
    %17 = vector.load %arg6[%c0_12, %c0_13] : memref<128x1xf32, #tpu.memory_space<vmem>>, vector<128x1xf32>
    tpu.vector_store %arg6[%c0_12, %c0_13], %16 {strides = array<i32>} : memref<128x1xf32, #tpu.memory_space<vmem>>, vector<128x1xf32>,
    %cst_14 = arith.constant -2.000000e-01 : f32
    %18 = vector.broadcast %cst_14 : f32 to vector<128x1xf32>
    %19 = arith.mulf %18, %8 : vector<128x1xf32>
    %20 = math.exp %19 : vector<128x1xf32>
    %c0_15 = arith.constant 0 : index
    %c0_16 = arith.constant 0 : index
    %21 = vector.load %arg7[%c0_15, %c0_16] : memref<128x1xf32, #tpu.memory_space<vmem>>, vector<128x1xf32>
    tpu.vector_store %arg7[%c0_15, %c0_16], %20 {strides = array<i32>} : memref<128x1xf32, #tpu.memory_space<vmem>>, vector<128x1xf32>,
    %cst_17 = arith.constant 0.000000e+00 : f32
    %22 = vector.broadcast %cst_17 : f32 to vector<128x1xf32>
    %23 = arith.subf %22, %13 : vector<128x1xf32>
    %24 = math.exp %23 : vector<128x1xf32>
    %c0_18 = arith.constant 0 : index
    %c0_19 = arith.constant 0 : index
    %25 = vector.load %arg8[%c0_18, %c0_19] : memref<128x1xf32, #tpu.memory_space<vmem>>, vector<128x1xf32>
    tpu.vector_store %arg8[%c0_18, %c0_19], %24 {strides = array<i32>} : memref<128x1xf32, #tpu.memory_space<vmem>>, vector<128x1xf32>,
    %cst_20 = arith.constant -2.000000e-01 : f32
    %26 = vector.broadcast %cst_20 : f32 to vector<128x1xf32>
    %27 = arith.mulf %26, %13 : vector<128x1xf32>
    %28 = math.exp %27 : vector<128x1xf32>
    %c0_21 = arith.constant 0 : index
    %c0_22 = arith.constant 0 : index
    %29 = vector.load %arg9[%c0_21, %c0_22] : memref<128x1xf32, #tpu.memory_space<vmem>>, vector<128x1xf32>
    tpu.vector_store %arg9[%c0_21, %c0_22], %28 {strides = array<i32>} : memref<128x1xf32, #tpu.memory_space<vmem>>, vector<128x1xf32>,
    return
  }
  func.func @transform_0(%arg0: i32) -> (i32, i32) {
    %c0_i32 = arith.constant 0 : i32
    %c0_i32_0 = arith.constant 0 : i32
    return %arg0, %c0_i32 : i32, i32
  }
  func.func @transform_1(%arg0: i32) -> (i32, i32) {
    %c0_i32 = arith.constant 0 : i32
    %c0_i32_0 = arith.constant 0 : i32
    %c0_i32_1 = arith.constant 0 : i32
    return %c0_i32, %c0_i32_0 : i32, i32
  }
  func.func @transform_2(%arg0: i32) -> (i32, i32) {
    %c0_i32 = arith.constant 0 : i32
    %c0_i32_0 = arith.constant 0 : i32
    %c0_i32_1 = arith.constant 0 : i32
    return %c0_i32, %c0_i32_0 : i32, i32
  }
  func.func @transform_3(%arg0: i32) -> (i32, i32) {
    %c0_i32 = arith.constant 0 : i32
    %c0_i32_0 = arith.constant 0 : i32
    %c0_i32_1 = arith.constant 0 : i32
    return %c0_i32, %c0_i32_0 : i32, i32
  }
  func.func @transform_4(%arg0: i32) -> (i32, i32) {
    %c0_i32 = arith.constant 0 : i32
    %c0_i32_0 = arith.constant 0 : i32
    return %arg0, %c0_i32 : i32, i32
  }
  func.func @transform_5(%arg0: i32) -> (i32, i32) {
    %c0_i32 = arith.constant 0 : i32
    %c0_i32_0 = arith.constant 0 : i32
    return %arg0, %c0_i32 : i32, i32
  }
  func.func @transform_6(%arg0: i32) -> (i32, i32) {
    %c0_i32 = arith.constant 0 : i32
    %c0_i32_0 = arith.constant 0 : i32
    return %arg0, %c0_i32 : i32, i32
  }
  func.func @transform_7(%arg0: i32) -> (i32, i32) {
    %c0_i32 = arith.constant 0 : i32
    %c0_i32_0 = arith.constant 0 : i32
    return %arg0, %c0_i32 : i32, i32
  }
  func.func @transform_8(%arg0: i32) -> (i32, i32) {
    %c0_i32 = arith.constant 0 : i32
    %c0_i32_0 = arith.constant 0 : i32
    return %arg0, %c0_i32 : i32, i32
  }
}

</mosaic_0001>

<bundles_post_ra>
// kernel: tpu_custom_call.1
= control target key start
LH: loop header
LB: loop body
LE: loop exit
PB: predicated region body
PF: predicated region fallthrough
CT: control target
= control target key end

     0   :  { %14 = vsyncpa [#allocation3], 0  ;;  %s1961_s0 = inlined_call_operand.vmem [shape: f32[256,64], index: 0, kind: input, shape index: {}]   ;;  %s1962_s1 = inlined_call_operand.vmem [shape: f32[64,128], index: 1, kind: input, shape index: {}]   ;;  %s1963_s2 = inlined_call_operand.vmem [shape: f32[1,128], index: 2, kind: input, shape index: {}]   ;;  %s1964_s3 = inlined_call_operand.vmem [shape: f32[1,128], index: 3, kind: input, shape index: {}]   ;;  %s1965_s4 = inlined_call_operand.hbm [shape: f32[256,128], index: 4, kind: output, shape index: {0}]   ;;  %s1966_s5 = inlined_call_operand.vmem [shape: f32[256,1], index: 5, kind: output, shape index: {1}]   ;;  %s1967_s6 = inlined_call_operand.vmem [shape: f32[256,1], index: 6, kind: output, shape index: {2}]   ;;  %s1968_s7 = inlined_call_operand.vmem [shape: f32[256,1], index: 7, kind: output, shape index: {3}]   ;;  %s1969_s8 = inlined_call_operand.vmem [shape: f32[256,1], index: 8, kind: output, shape index: {4}]  }
   0x1   :  { %16 = vsyncpa [#allocation3 + $0x1], 0  ;;  %s1581_s27 = smov 0   ;;  %s1583_s28 = smov 0  }
   0x2   :  { %s1585_s29 = smov 0   ;;  %s1587_s30 = smov 0  }
   0x3 LB: > { %s1602_s9 = sadd.s32 4294967295, %s1531_s30   ;;  %s1173_s10 = sadd.s32 4294967294, %s1531_s30   ;;  %s1531_s30 = sphi %s1587_s30, %s1975_s30   ;;  %s1527_s29 = sphi %s1585_s29, %s1974_s29   ;;  %s1523_s28 = sphi %s1583_s28, %s1973_s28   ;;  %s1519_s27 = sphi %s1581_s27, %s1972_s27  }
   0x4   : > { %s1606_s11 = sadd.s32 1, %s1531_s30   ;;  %s118_s12 = sadd.s32 1, %s1527_s29 }
   0x5   : > { %s115_s13 = ssub.s32 %s1531_s30, %s1606_s11  ;;  %p128_p0 = scmp.ne.s32.totalorder %s1527_s29, %s1523_s28 }
   0x6   : > { %p116_p1 = scmp.eq.s32.totalorder %s115_s13, 0  ;;  %p129_p2 = scmp.eq.s32.totalorder %s1602_s9, 1 }
   0x7   : > { %p134_p3 = scmp.ne.s32.totalorder %s1523_s28, %s1519_s27  ;;  %p135_p4 = scmp.eq.s32.totalorder %s1173_s10, 1 }
   0x8   : > { %s1617_s14 = scalar_select %p116_p1, %s1527_s29, %s118_s12  }
   0x9   : > { %p1619_p5 = por %p129_p2, %p128_p0  ;;  %p1623_p6 = por %p135_p4, %p134_p3 }
   0xa   : > { %p1176_p7 = scmp.ge.s32.totalorder %s1531_s30, 1  ;;  %p275_p8 = scmp.lt.s32.totalorder %s1531_s30, 3 }
   0xc   : > { %p276_p9 = pnand %p1176_p7, %p275_p8 }
   0xd   : > { %v376_v0 = vld [vmem:[%s1962_s1] sm:$0xff] (!%p276_p9)  ;;  %v377_v1 = vld [vmem:[%s1962_s1 + $0x8] sm:$0xff] (!%p276_p9)  ;;  %v378_v2 = vld [vmem:[%s1962_s1 + $0x10] sm:$0xff] (!%p276_p9)  ;;  %s1178_s23 = sshll.u32 (!%p276_p9), %s1602_s9, 4  ;;  %vm384_vm0 = vcmask (!%p276_p9), 523264   ;;  %s1211_s20 = sshll.u32 (!%p276_p9), %s1602_s9, 11 }
   0xe   : > { %279 = sbr.rel (%p276_p9) target bundleno = 468 (0x1d4), region = 36  ;;  %v1276_v3 = vpack.c.bf16 (!%p276_p9), %v377_v1, %v376_v0  ;;  %v379_v4 = vld [vmem:[%s1962_s1 + $0x18] sm:$0xff] (!%p276_p9)  ;;  %p330_p10 = scmp.lt.s32.totalorder (!%p276_p9), %s1178_s23, 31  ;;  %v380_v6 = vld [vmem:[%s1962_s1 + $0x20] sm:$0xff] (!%p276_p9)  ;;  %v381_v7 = vld [vmem:[%s1962_s1 + $0x28] sm:$0xff] (!%p276_p9) }
   0xf   : > { %v1280_v5 = vpack.c.bf16 (!%p276_p9), %v379_v4, %v378_v2  ;;  %v1284_v8 = vpack.c.bf16 (!%p276_p9), %v381_v7, %v380_v6  ;;  %v382_v9 = vld [vmem:[%s1962_s1 + $0x30] sm:$0xff] (!%p276_p9)  ;;  %v383_v10 = vld [vmem:[%s1962_s1 + $0x38] sm:$0xff] (!%p276_p9)  ;;  %v1700_v28 = vld [vmem:[%s1963_s2] ss:$0 sm:$0xff] (!%p276_p9)  ;;  %s1533_s9 = smov (!%p276_p9), [#allocation2]  }
  0x10   : > { %1277 = vmatprep.subr.bf16.mxu0 (!%p276_p9), %v1276_v3  ;;  %1292 = vmatprep.subr.bf16.mxu1 (!%p276_p9), %v1276_v3  ;;  %v1288_v13 = vpack.c.bf16 (!%p276_p9), %v383_v10, %v382_v9  ;;  %v1713_v35 = vld [vmem:[%s1964_s3] ss:$0 sm:$0xff] (!%p276_p9)  ;;  %s1473_s12 = sshll.u32 (!%p276_p9), %s1533_s9, 4  ;;  %s1474_s12 = int_to_ptr.vmem [resolvable:$false] %s1473_s12 }
  0x11   : > { %1279 = vmatpush3.bf16.msra.mxu0 (!%p276_p9), %v1276_v3  ;;  %1296 = vmatpush3.bf16.msra.mxu1 (!%p276_p9), %v1276_v3 }
  0x12   : > { %1281 = vmatprep.subr.bf16.mxu0 (!%p276_p9), %v1280_v5  ;;  %1293 = vmatprep.subr.bf16.mxu1 (!%p276_p9), %v1280_v5 }
  0x15   : > { %s1977_s23 = smov (!%p330_p10, %s1178_s23), 31  ;;  %1283 = vmatpush3.bf16.msra.mxu0 %v1280_v5  ;;  %1297 = vmatpush3.bf16.msra.mxu1 %v1280_v5 }
  0x16   : > { %s1648_s17 = sshll.u32 %s1977_s23, 3  ;;  %1285 = vmatprep.subr.bf16.mxu0 %v1284_v8  ;;  %1294 = vmatprep.subr.bf16.mxu1 %v1284_v8  ;;  %s298_s23 = sand.u32 1, %s1523_s28  }
  0x17   : > { %s1660_s25 = scalar_lea.vmem %s1961_s0, %s1648_s17  ;;  %s1177_s26 = sshll.u32 %s298_s23, 7 }
  0x18   : > { %v360_v11 = vld [vmem:[%s1660_s25] sm:$0xff]  ;;  %v361_v14 = vld [vmem:[%s1660_s25 + $0x8] sm:$0xff]  ;;  %v362_v16 = vld [vmem:[%s1660_s25 + $0x10] sm:$0xff]  ;;  %s1702_s13 = scalar_lea.vmem [#allocation2], %s1177_s26  ;;  %s1768_s26 = scalar_lea.sflag [#allocation3], %s298_s23 }
  0x19   : > { %v368_v12 = vld [vmem:[%s1660_s25 + $0x40] sm:$0xff]  ;;  %1252 = vmatprep.mubr.msk.f32.mxu0 %vm384_vm0, %v360_v11  ;;  %1287 = vmatpush3.bf16.msra.mxu0 %v1284_v8  ;;  %v369_v15 = vld [vmem:[%s1660_s25 + $0x48] sm:$0xff]  ;;  %v370_v17 = vld [vmem:[%s1660_s25 + $0x50] sm:$0xff]  ;;  %s995_s21 = sshll.u32 %s1702_s13, 4  ;;  %s1764_s21 = int_to_ptr.vmem [resolvable:$true] %s995_s21 }
  0x1a   : > { %1264 = vmatprep.mubr.msk.f32.mxu1 %vm384_vm0, %v368_v12  ;;  %1298 = vmatpush3.bf16.msra.mxu1 %v1284_v8  ;;  %v363_v18 = vld [vmem:[%s1660_s25 + $0x18] sm:$0xff]  ;;  %v364_v20 = vld [vmem:[%s1660_s25 + $0x20] sm:$0xff]  ;;  %v365_v22 = vld [vmem:[%s1660_s25 + $0x28] sm:$0xff]  ;;  %s1469_s10 = scalar_lea.vmem %s1764_s21, 2048  ;;  %p1476_p0 = scmp.lt.s32.totalorder %s1764_s21, %s1474_s12 }
  0x1b   : > { %1289 = vmatprep.subr.bf16.mxu0 %v1288_v13  ;;  %1295 = vmatprep.subr.bf16.mxu1 %v1288_v13  ;;  %v371_v19 = vld [vmem:[%s1660_s25 + $0x58] sm:$0xff]  ;;  %v372_v21 = vld [vmem:[%s1660_s25 + $0x60] sm:$0xff]  ;;  %v373_v23 = vld [vmem:[%s1660_s25 + $0x68] sm:$0xff]  ;;  %p1470_p11 = scmp.ne.s32.totalorder %s1764_s21, %s1469_s10 }
  0x1c   : > { %v366_v24 = vld [vmem:[%s1660_s25 + $0x30] sm:$0xff]  ;;  %v367_v26 = vld [vmem:[%s1660_s25 + $0x38] sm:$0xff] }
  0x1d   : > { %1291 = vmatpush3.bf16.msra.mxu0 %v1288_v13  ;;  %v374_v25 = vld [vmem:[%s1660_s25 + $0x70] sm:$0xff]  ;;  %v375_v27 = vld [vmem:[%s1660_s25 + $0x78] sm:$0xff]  ;;  %s1762_s25 = scalar_lea.hbm %s1965_s4, %s1211_s20  ;;  %p1471_p12 = pnand %p1470_p11, %p1619_p5 }
  0x1e   : > { %1299 = vmatpush3.bf16.msra.mxu1 %v1288_v13 }
  0x1f   : > { %p1472_p13 = pneg %p1471_p12 }
  0x20   : > { %1253 = vmatmul.mubr.msk.f32.vlgmr.msra.gmra.mrb[0].mxu0 %vm384_vm0, %v361_v14 }
  0x21   : > { %1265 = vmatmul.mubr.msk.f32.vlgmr.msra.gmra.mrb[0].mxu1 %vm384_vm0, %v369_v15  ;;  %1255 = vmatprep.mubr.msk.f32.mxu0 %vm384_vm0, %v362_v16 }
  0x22   : > { %1267 = vmatprep.mubr.msk.f32.mxu1 %vm384_vm0, %v370_v17 }
  0x24   : > { %1256 = vmatmul.mubr.msk.f32.gmra.mrb[2].mxu0 %vm384_vm0, %v363_v18 }
  0x25   : > { %1268 = vmatmul.mubr.msk.f32.gmra.mrb[2].mxu1 %vm384_vm0, %v371_v19  ;;  %1258 = vmatprep.mubr.msk.f32.mxu0 %vm384_vm0, %v364_v20 }
  0x26   : > { %1270 = vmatprep.mubr.msk.f32.mxu1 %vm384_vm0, %v372_v21 }
  0x28   : > { %1259 = vmatmul.mubr.msk.f32.gmra.mrb[4].mxu0 %vm384_vm0, %v365_v22 }
  0x29   : > { %1271 = vmatmul.mubr.msk.f32.gmra.mrb[4].mxu1 %vm384_vm0, %v373_v23  ;;  %1261 = vmatprep.mubr.msk.f32.mxu0 %vm384_vm0, %v366_v24 }
  0x2a   : > { %1273 = vmatprep.mubr.msk.f32.mxu1 %vm384_vm0, %v374_v25 }
  0x2c   : > { %1262 = vmatmul.mubr.msk.f32.gmra.mrb[6].mxu0 %vm384_vm0, %v367_v26 }
  0x2d   : > { %1274 = vmatmul.mubr.msk.f32.gmra.mrb[6].mxu1 %vm384_vm0, %v375_v27 }
  0xf3   : > { %v1254_v29 = vpop.f32.mrb[0].mxu0 }
  0xf4   : > { %v1266_v30 = vpop.f32.mrb[0].mxu1  ;;  %579 = vst [vmem:[%s1702_s13 + $0x8] sm:$0xff] %v1254_v29  ;;  %v499_v31 = vpop.f32.mrb[1].mxu0  ;;  %v602_v34 = vmul.f32 %v1254_v29, %v1700_v28  ;;  %v657_v38 = vmul.f32 %v1254_v29, %v1713_v35 }
  0xf5   : > { %587 = vst [vmem:[%s1702_s13 + $0x48] sm:$0xff] %v1266_v30  ;;  %v539_v32 = vpop.f32.mrb[1].mxu1  ;;  %v610_v33 = vmul.f32 %v1266_v30, %v1700_v28  ;;  %578 = vst [vmem:[%s1702_s13] sm:$0xff] %v499_v31  ;;  %v601_v39 = vmul.f32 %v1700_v28, %v499_v31  ;;  %v665_v44 = vmul.f32 %v1266_v30, %v1713_v35 }
  0xf6   : > { %586 = vst [vmem:[%s1702_s13 + $0x40] sm:$0xff] %v539_v32  ;;  %619 = vadd.xlane.f32.xlu0 %v602_v34  ;;  %v609_v45 = vmul.f32 %v1700_v28, %v539_v32  ;;  %v656_v51 = vmul.f32 %v1713_v35, %v499_v31  ;;  %v664_v55 = vmul.f32 %v1713_v35, %v539_v32 }
  0xf7   : > { %635 = vadd.xlane.f32.xlu1 %v610_v33  ;;  %v1257_v36 = vpop.f32.mrb[2].mxu0 }
  0xf8   : > { %v1269_v37 = vpop.f32.mrb[2].mxu1  ;;  %581 = vst [vmem:[%s1702_s13 + $0x18] sm:$0xff] %v1257_v36  ;;  %v509_v40 = vpop.f32.mrb[3].mxu0  ;;  %v604_v48 = vmul.f32 %v1257_v36, %v1700_v28  ;;  %v659_v57 = vmul.f32 %v1257_v36, %v1713_v35 }
  0xf9   : > { %589 = vst [vmem:[%s1702_s13 + $0x58] sm:$0xff] %v1269_v37  ;;  %v549_v41 = vpop.f32.mrb[3].mxu1  ;;  %580 = vst [vmem:[%s1702_s13 + $0x10] sm:$0xff] %v509_v40  ;;  %v612_v54 = vmul.f32 %v1269_v37, %v1700_v28  ;;  %v667_v58 = vmul.f32 %v1269_v37, %v1713_v35  ;;  %v658_v59 = vmul.f32 %v1713_v35, %v509_v40 }
  0xfa   : > { %588 = vst [vmem:[%s1702_s13 + $0x50] sm:$0xff] %v549_v41  ;;  %617 = vadd.xlane.f32.xlu0 %v601_v39  ;;  %v611_v56 = vmul.f32 %v1700_v28, %v549_v41  ;;  %v666_v60 = vmul.f32 %v1713_v35, %v549_v41  ;;  %v603_v61 = vmul.f32 %v1700_v28, %v509_v40 }
  0xfb   : > { %674 = vadd.xlane.f32.xlu1 %v657_v38  ;;  %v1260_v42 = vpop.f32.mrb[4].mxu0 }
  0xfc   : > { %v1272_v43 = vpop.f32.mrb[4].mxu1  ;;  %583 = vst [vmem:[%s1702_s13 + $0x28] sm:$0xff] %v1260_v42  ;;  %v519_v46 = vpop.f32.mrb[5].mxu0  ;;  %v606_v62 = vmul.f32 %v1260_v42, %v1700_v28  ;;  %v661_v2 = vmul.f32 %v1260_v42, %v1713_v35 }
  0xfd   : > { %591 = vst [vmem:[%s1702_s13 + $0x68] sm:$0xff] %v1272_v43  ;;  %v559_v47 = vpop.f32.mrb[5].mxu1  ;;  %582 = vst [vmem:[%s1702_s13 + $0x20] sm:$0xff] %v519_v46  ;;  %v605_v63 = vmul.f32 %v1700_v28, %v519_v46  ;;  %v614_v0 = vmul.f32 %v1272_v43, %v1700_v28  ;;  %v660_v3 = vmul.f32 %v1713_v35, %v519_v46 }
  0xfe   : > { %590 = vst [vmem:[%s1702_s13 + $0x60] sm:$0xff] %v559_v47  ;;  %633 = vadd.xlane.f32.xlu0 %v609_v45  ;;  %v613_v1 = vmul.f32 %v1700_v28, %v559_v47  ;;  %v669_v4 = vmul.f32 %v1272_v43, %v1713_v35  ;;  %v668_v5 = vmul.f32 %v1713_v35, %v559_v47 }
  0xff   : > { %690 = vadd.xlane.f32.xlu1 %v665_v44  ;;  %v1263_v49 = vpop.f32.mrb[6].mxu0 }
 0x100   : > { %v1275_v50 = vpop.f32.mrb[6].mxu1  ;;  %585 = vst [vmem:[%s1702_s13 + $0x38] sm:$0xff] %v1263_v49  ;;  %v529_v52 = vpop.f32.mrb[7].mxu0  ;;  %v608_v6 = vmul.f32 %v1263_v49, %v1700_v28  ;;  %v663_v10 = vmul.f32 %v1263_v49, %v1713_v35 }
 0x101   : > { %593 = vst [vmem:[%s1702_s13 + $0x78] sm:$0xff] %v1275_v50  ;;  %v569_v53 = vpop.f32.mrb[7].mxu1  ;;  %584 = vst [vmem:[%s1702_s13 + $0x30] sm:$0xff] %v529_v52  ;;  %v607_v7 = vmul.f32 %v1700_v28, %v529_v52  ;;  %v616_v8 = vmul.f32 %v1275_v50, %v1700_v28  ;;  %v662_v11 = vmul.f32 %v1713_v35, %v529_v52 }
 0x102   : > { %592 = vst [vmem:[%s1702_s13 + $0x70] sm:$0xff] %v569_v53  ;;  %672 = vadd.xlane.f32.xlu0 %v656_v51  ;;  %v615_v9 = vmul.f32 %v1700_v28, %v569_v53  ;;  %v671_v12 = vmul.f32 %v1275_v50, %v1713_v35  ;;  %v670_v13 = vmul.f32 %v1713_v35, %v569_v53  ;;  %s1475_s13 = scalar_lea.vmem %s1474_s12, 4096 }
 0x103   : > { %623 = vadd.xlane.f32.xlu1 %v604_v48  ;;  %p1477_p1 = scmp.lt.s32.totalorder %s1475_s13, %s1469_s10 }
 0x105   : > { %p1478_p2 = por %p1477_p1, %p1476_p0 }
 0x106   : > { %688 = vadd.xlane.f32.xlu0 %v664_v55 }
 0x107   : > { %639 = vadd.xlane.f32.xlu1 %v612_v54  ;;  %p1479_p3 = pnand %p1478_p2, %p1472_p13 }
 0x10a   : > { %637 = vadd.xlane.f32.xlu0 %v611_v56 }
 0x10b   : > { %678 = vadd.xlane.f32.xlu1 %v659_v57 }
 0x10e   : > { %676 = vadd.xlane.f32.xlu0 %v658_v59 }
 0x10f   : > { %694 = vadd.xlane.f32.xlu1 %v667_v58 }
 0x112   : > { %692 = vadd.xlane.f32.xlu0 %v666_v60 }
 0x113   : > { %621 = vadd.xlane.f32.xlu1 %v603_v61 }
 0x116   : > { %625 = vadd.xlane.f32.xlu0 %v605_v63 }
 0x117   : > { %627 = vadd.xlane.f32.xlu1 %v606_v62 }
 0x11a   : > { %641 = vadd.xlane.f32.xlu0 %v613_v1 }
 0x11b   : > { %643 = vadd.xlane.f32.xlu1 %v614_v0 }
 0x11e   : > { %680 = vadd.xlane.f32.xlu0 %v660_v3 }
 0x11f   : > { %682 = vadd.xlane.f32.xlu1 %v661_v2 }
 0x122   : > { %696 = vadd.xlane.f32.xlu0 %v668_v5 }
 0x123   : > { %698 = vadd.xlane.f32.xlu1 %v669_v4 }
 0x126   : > { %629 = vadd.xlane.f32.xlu0 %v607_v7 }
 0x127   : > { %631 = vadd.xlane.f32.xlu1 %v608_v6 }
 0x12a   : > { %645 = vadd.xlane.f32.xlu0 %v615_v9 }
 0x12b   : > { %647 = vadd.xlane.f32.xlu1 %v616_v8 }
 0x12e   : > { %684 = vadd.xlane.f32.xlu0 %v662_v11 }
 0x12f   : > { %686 = vadd.xlane.f32.xlu1 %v663_v10 }
 0x132   : > { %700 = vadd.xlane.f32.xlu0 %v670_v13 }
 0x133   : > { %702 = vadd.xlane.f32.xlu1 %v671_v12 }
 0x134   : > { %1482 = shalt.err (!%p1479_p3)
}
 0x135   : > { %s1483_s23 = scalar_lea.hbm %s1762_s25, 2048  ;;  %s1487_s20 = scalar_lea.hbm %s1965_s4, 4096 }
 0x136   : > { %p1484_p4 = scmp.ne.s32.totalorder %s1762_s25, %s1483_s23  ;;  %p1488_p9 = scmp.lt.u32.totalorder %s1762_s25, %s1965_s4 }
 0x137   : > { %p1489_p10 = scmp.lt.u32.totalorder %s1487_s20, %s1483_s23  ;;  %p1491_p12 = scmp.lt.u32.totalorder %s1483_s23, %s1762_s25 }
 0x138   : > { %p1485_p7 = pnand %p1484_p4, %p1619_p5 }
 0x139   : > { %p1490_p11 = por %p1489_p10, %p1488_p9 }
 0x13a   : > { %p1486_p8 = pneg %p1485_p7 }
 0x13b   : > { %p1492_p13 = por %p1491_p12, %p1490_p11 }
 0x13d   : > { %p1493_p0 = pnand %p1492_p13, %p1486_p8 }
 0x13f   : > { %1496 = shalt.err (!%p1493_p0)
}
 0x140   : > { %s1534_s10 = smov 128   ;;  %s1535_s9 = smov 8   ;;  %vm752_vm1 = vcmask 7168  }
 0x141   : > { %1300 = dma.vmem_to_hbm [thread:$0]  (%p1619_p5), %s1764_s21, 2048, %s1762_s25, %s1768_s26, %s1534_s10, %s1534_s10, %s1535_s9  }
 0x142   : > { %s1796_s25 = scalar_lea.vmem %s1966_s5, %s1648_s17  ;;  %s1802_s13 = scalar_lea.vmem %s1967_s6, %s1648_s17 }
 0x143   : > { %s1810_s19 = scalar_lea.vmem %s1968_s7, %s1648_s17  ;;  %s1818_s24 = scalar_lea.vmem %s1969_s8, %s1648_s17 }
 0x183   : > { %v620_v15 = vpop.xlane.xlu0 %619 }
 0x184   : > { %v636_v14 = vpop.xlane.xlu1 %635  ;;  %v705_v18 = vsub.f32 0.0, %v620_v15  ;;  %v770_v19 = vmul.f32 -0.2, %v620_v15 }
 0x185   : > { %v713_v16 = vsub.f32 0.0, %v636_v14  ;;  %v778_v17 = vmul.f32 -0.2, %v636_v14 }
 0x186   : > { %v722_v22 = vmul.f32 1.442695, %v705_v18  ;;  %v787_v23 = vmul.f32 1.442695, %v770_v19 }
 0x187   : > { %v738_v20 = vmul.f32 1.442695, %v713_v16  ;;  %v803_v21 = vmul.f32 1.442695, %v778_v17  ;;  %v618_v25 = vpop.xlane.xlu0 %617 }
 0x188   : > { %v675_v24 = vpop.xlane.xlu1 %674  ;;  %v704_v28 = vsub.f32 0.0, %v618_v25  ;;  %v769_v29 = vmul.f32 -0.2, %v618_v25 }
 0x189   : > { %1341 = vpow2.f32 %v738_v20  ;;  %v834_v26 = vsub.f32 0.0, %v675_v24  ;;  %v898_v27 = vmul.f32 -0.2, %v675_v24 }
 0x18a   : > { %1343 = vpow2.f32 %v803_v21  ;;  %v720_v32 = vmul.f32 1.442695, %v704_v28  ;;  %v785_v33 = vmul.f32 1.442695, %v769_v29 }
 0x18b   : > { %1345 = vpow2.f32 %v722_v22  ;;  %v851_v30 = vmul.f32 1.442695, %v834_v26  ;;  %v915_v31 = vmul.f32 1.442695, %v898_v27  ;;  %v634_v35 = vpop.xlane.xlu0 %633 }
 0x18c   : > { %1347 = vpow2.f32 %v787_v23  ;;  %v691_v34 = vpop.xlane.xlu1 %690  ;;  %v712_v38 = vsub.f32 0.0, %v634_v35  ;;  %v777_v39 = vmul.f32 -0.2, %v634_v35 }
 0x18d   : > { %1349 = vpow2.f32 %v851_v30  ;;  %v842_v36 = vsub.f32 0.0, %v691_v34  ;;  %v906_v37 = vmul.f32 -0.2, %v691_v34 }
 0x18e   : > { %1351 = vpow2.f32 %v915_v31  ;;  %v736_v42 = vmul.f32 1.442695, %v712_v38  ;;  %v801_v43 = vmul.f32 1.442695, %v777_v39 }
 0x18f   : > { %1353 = vpow2.f32 %v720_v32  ;;  %v867_v40 = vmul.f32 1.442695, %v842_v36  ;;  %v931_v41 = vmul.f32 1.442695, %v906_v37  ;;  %v673_v44 = vpop.xlane.xlu0 %672 }
 0x190   : > { %1355 = vpow2.f32 %v785_v33  ;;  %v624_v45 = vpop.xlane.xlu1 %623  ;;  %v833_v46 = vsub.f32 0.0, %v673_v44  ;;  %v897_v47 = vmul.f32 -0.2, %v673_v44 }
 0x191   : > { %1357 = vpow2.f32 %v867_v40  ;;  %v707_v48 = vsub.f32 0.0, %v624_v45  ;;  %v772_v49 = vmul.f32 -0.2, %v624_v45 }
 0x192   : > { %1359 = vpow2.f32 %v931_v41  ;;  %v849_v51 = vmul.f32 1.442695, %v833_v46  ;;  %v913_v52 = vmul.f32 1.442695, %v897_v47 }
 0x193   : > { %v1342_v50 = vpop.eup %1341  ;;  %1361 = vpow2.f32 %v736_v42  ;;  %v726_v53 = vmul.f32 1.442695, %v707_v48  ;;  %v791_v55 = vmul.f32 1.442695, %v772_v49  ;;  %v689_v56 = vpop.xlane.xlu0 %688 }
 0x194   : > { %v1344_v54 = vpop.eup %1343  ;;  %762 = vst.msk [vmem:[%s1796_s25 + $0x48] sm:$0xff] %vm752_vm1, %v1342_v50  ;;  %1363 = vpow2.f32 %v801_v43  ;;  %v640_v57 = vpop.xlane.xlu1 %639  ;;  %v841_v59 = vsub.f32 0.0, %v689_v56  ;;  %v905_v60 = vmul.f32 -0.2, %v689_v56 }
 0x195   : > { %v1346_v58 = vpop.eup %1345  ;;  %826 = vst.msk [vmem:[%s1802_s13 + $0x48] sm:$0xff] %vm752_vm1, %v1344_v54  ;;  %1365 = vpow2.f32 %v849_v51  ;;  %v715_v61 = vsub.f32 0.0, %v640_v57  ;;  %v780_v63 = vmul.f32 -0.2, %v640_v57 }
 0x196   : > { %v1348_v62 = vpop.eup %1347  ;;  %754 = vst.msk [vmem:[%s1796_s25 + $0x8] sm:$0xff] %vm752_vm1, %v1346_v58  ;;  %1367 = vpow2.f32 %v913_v52  ;;  %v865_v1 = vmul.f32 1.442695, %v841_v59  ;;  %v929_v2 = vmul.f32 1.442695, %v905_v60 }
 0x197   : > { %v1350_v0 = vpop.eup %1349  ;;  %818 = vst.msk [vmem:[%s1802_s13 + $0x8] sm:$0xff] %vm752_vm1, %v1348_v62  ;;  %1369 = vpow2.f32 %v726_v53  ;;  %v742_v3 = vmul.f32 1.442695, %v715_v61  ;;  %v807_v5 = vmul.f32 1.442695, %v780_v63  ;;  %v638_v6 = vpop.xlane.xlu0 %637 }
 0x198   : > { %v1352_v4 = vpop.eup %1351  ;;  %882 = vst.msk [vmem:[%s1810_s19 + $0x8] sm:$0xff] %vm752_vm1, %v1350_v0  ;;  %1371 = vpow2.f32 %v791_v55  ;;  %v679_v7 = vpop.xlane.xlu1 %678  ;;  %v714_v9 = vsub.f32 0.0, %v638_v6  ;;  %v779_v10 = vmul.f32 -0.2, %v638_v6 }
 0x199   : > { %v1354_v8 = vpop.eup %1353  ;;  %946 = vst.msk [vmem:[%s1818_s24 + $0x8] sm:$0xff] %vm752_vm1, %v1352_v4  ;;  %1373 = vpow2.f32 %v865_v1  ;;  %v836_v11 = vsub.f32 0.0, %v679_v7  ;;  %v900_v13 = vmul.f32 -0.2, %v679_v7 }
 0x19a   : > { %v1356_v12 = vpop.eup %1355  ;;  %753 = vst.msk [vmem:[%s1796_s25] sm:$0xff] %vm752_vm1, %v1354_v8  ;;  %1375 = vpow2.f32 %v929_v2  ;;  %v740_v15 = vmul.f32 1.442695, %v714_v9  ;;  %v805_v16 = vmul.f32 1.442695, %v779_v10 }
 0x19b   : > { %v1358_v14 = vpop.eup %1357  ;;  %817 = vst.msk [vmem:[%s1802_s13] sm:$0xff] %vm752_vm1, %v1356_v12  ;;  %1377 = vpow2.f32 %v742_v3  ;;  %v855_v17 = vmul.f32 1.442695, %v836_v11  ;;  %v919_v19 = vmul.f32 1.442695, %v900_v13  ;;  %v677_v21 = vpop.xlane.xlu0 %676 }
 0x19c   : > { %v1360_v18 = vpop.eup %1359  ;;  %890 = vst.msk [vmem:[%s1810_s19 + $0x48] sm:$0xff] %vm752_vm1, %v1358_v14  ;;  %1379 = vpow2.f32 %v807_v5  ;;  %v695_v20 = vpop.xlane.xlu1 %694  ;;  %v835_v25 = vsub.f32 0.0, %v677_v21  ;;  %v899_v27 = vmul.f32 -0.2, %v677_v21 }
 0x19d   : > { %v1362_v22 = vpop.eup %1361  ;;  %954 = vst.msk [vmem:[%s1818_s24 + $0x48] sm:$0xff] %vm752_vm1, %v1360_v18  ;;  %1381 = vpow2.f32 %v740_v15  ;;  %v844_v23 = vsub.f32 0.0, %v695_v20  ;;  %v908_v24 = vmul.f32 -0.2, %v695_v20 }
 0x19e   : > { %v1364_v26 = vpop.eup %1363  ;;  %761 = vst.msk [vmem:[%s1796_s25 + $0x40] sm:$0xff] %vm752_vm1, %v1362_v22  ;;  %1383 = vpow2.f32 %v805_v16  ;;  %v853_v31 = vmul.f32 1.442695, %v835_v25  ;;  %v917_v33 = vmul.f32 1.442695, %v899_v27 }
 0x19f   : > { %v1366_v28 = vpop.eup %1365  ;;  %825 = vst.msk [vmem:[%s1802_s13 + $0x40] sm:$0xff] %vm752_vm1, %v1364_v26  ;;  %1385 = vpow2.f32 %v855_v17  ;;  %v871_v29 = vmul.f32 1.442695, %v844_v23  ;;  %v935_v30 = vmul.f32 1.442695, %v908_v24  ;;  %v693_v34 = vpop.xlane.xlu0 %692 }
 0x1a0   : > { %v1368_v32 = vpop.eup %1367  ;;  %881 = vst.msk [vmem:[%s1810_s19] sm:$0xff] %vm752_vm1, %v1366_v28  ;;  %1387 = vpow2.f32 %v919_v19  ;;  %v622_v35 = vpop.xlane.xlu1 %621  ;;  %v843_v37 = vsub.f32 0.0, %v693_v34  ;;  %v907_v38 = vmul.f32 -0.2, %v693_v34 }
 0x1a1   : > { %v1370_v36 = vpop.eup %1369  ;;  %945 = vst.msk [vmem:[%s1818_s24] sm:$0xff] %vm752_vm1, %v1368_v32  ;;  %1389 = vpow2.f32 %v871_v29  ;;  %v706_v39 = vsub.f32 0.0, %v622_v35  ;;  %v771_v41 = vmul.f32 -0.2, %v622_v35 }
 0x1a2   : > { %v1372_v40 = vpop.eup %1371  ;;  %756 = vst.msk [vmem:[%s1796_s25 + $0x18] sm:$0xff] %vm752_vm1, %v1370_v36  ;;  %1391 = vpow2.f32 %v935_v30  ;;  %v869_v43 = vmul.f32 1.442695, %v843_v37  ;;  %v933_v44 = vmul.f32 1.442695, %v907_v38 }
 0x1a3   : > { %v1374_v42 = vpop.eup %1373  ;;  %820 = vst.msk [vmem:[%s1802_s13 + $0x18] sm:$0xff] %vm752_vm1, %v1372_v40  ;;  %1393 = vpow2.f32 %v853_v31  ;;  %v724_v45 = vmul.f32 1.442695, %v706_v39  ;;  %v789_v47 = vmul.f32 1.442695, %v771_v41  ;;  %v626_v49 = vpop.xlane.xlu0 %625 }
 0x1a4   : > { %v1376_v46 = vpop.eup %1375  ;;  %889 = vst.msk [vmem:[%s1810_s19 + $0x40] sm:$0xff] %vm752_vm1, %v1374_v42  ;;  %1395 = vpow2.f32 %v917_v33  ;;  %v628_v48 = vpop.xlane.xlu1 %627  ;;  %v708_v53 = vsub.f32 0.0, %v626_v49  ;;  %v773_v55 = vmul.f32 -0.2, %v626_v49 }
 0x1a5   : > { %v1378_v50 = vpop.eup %1377  ;;  %953 = vst.msk [vmem:[%s1818_s24 + $0x40] sm:$0xff] %vm752_vm1, %v1376_v46  ;;  %1397 = vpow2.f32 %v869_v43  ;;  %v709_v51 = vsub.f32 0.0, %v628_v48  ;;  %v774_v52 = vmul.f32 -0.2, %v628_v48 }
 0x1a6   : > { %v1380_v54 = vpop.eup %1379  ;;  %764 = vst.msk [vmem:[%s1796_s25 + $0x58] sm:$0xff] %vm752_vm1, %v1378_v50  ;;  %1399 = vpow2.f32 %v933_v44  ;;  %v728_v59 = vmul.f32 1.442695, %v708_v53  ;;  %v793_v61 = vmul.f32 1.442695, %v773_v55 }
 0x1a7   : > { %v1382_v56 = vpop.eup %1381  ;;  %828 = vst.msk [vmem:[%s1802_s13 + $0x58] sm:$0xff] %vm752_vm1, %v1380_v54  ;;  %1401 = vpow2.f32 %v724_v45  ;;  %v730_v57 = vmul.f32 1.442695, %v709_v51  ;;  %v795_v58 = vmul.f32 1.442695, %v774_v52  ;;  %v642_v63 = vpop.xlane.xlu0 %641 }
 0x1a8   : > { %v1384_v60 = vpop.eup %1383  ;;  %763 = vst.msk [vmem:[%s1796_s25 + $0x50] sm:$0xff] %vm752_vm1, %v1382_v56  ;;  %1403 = vpow2.f32 %v789_v47  ;;  %v644_v62 = vpop.xlane.xlu1 %643  ;;  %v716_v3 = vsub.f32 0.0, %v642_v63  ;;  %v781_v5 = vmul.f32 -0.2, %v642_v63 }
 0x1a9   : > { %v1386_v0 = vpop.eup %1385  ;;  %827 = vst.msk [vmem:[%s1802_s13 + $0x50] sm:$0xff] %vm752_vm1, %v1384_v60  ;;  %1405 = vpow2.f32 %v730_v57  ;;  %v717_v1 = vsub.f32 0.0, %v644_v62  ;;  %v782_v2 = vmul.f32 -0.2, %v644_v62 }
 0x1aa   : > { %v1388_v4 = vpop.eup %1387  ;;  %884 = vst.msk [vmem:[%s1810_s19 + $0x18] sm:$0xff] %vm752_vm1, %v1386_v0  ;;  %1407 = vpow2.f32 %v795_v58  ;;  %v744_v9 = vmul.f32 1.442695, %v716_v3  ;;  %v809_v11 = vmul.f32 1.442695, %v781_v5 }
 0x1ab   : > { %v1390_v6 = vpop.eup %1389  ;;  %948 = vst.msk [vmem:[%s1818_s24 + $0x18] sm:$0xff] %vm752_vm1, %v1388_v4  ;;  %1409 = vpow2.f32 %v728_v59  ;;  %v746_v7 = vmul.f32 1.442695, %v717_v1  ;;  %v811_v8 = vmul.f32 1.442695, %v782_v2  ;;  %v681_v13 = vpop.xlane.xlu0 %680 }
 0x1ac   : > { %v1392_v10 = vpop.eup %1391  ;;  %892 = vst.msk [vmem:[%s1810_s19 + $0x58] sm:$0xff] %vm752_vm1, %v1390_v6  ;;  %1411 = vpow2.f32 %v793_v61  ;;  %v683_v12 = vpop.xlane.xlu1 %682  ;;  %v837_v17 = vsub.f32 0.0, %v681_v13  ;;  %v901_v19 = vmul.f32 -0.2, %v681_v13 }
 0x1ad   : > { %v1394_v14 = vpop.eup %1393  ;;  %956 = vst.msk [vmem:[%s1818_s24 + $0x58] sm:$0xff] %vm752_vm1, %v1392_v10  ;;  %1413 = vpow2.f32 %v746_v7  ;;  %v838_v15 = vsub.f32 0.0, %v683_v12  ;;  %v902_v16 = vmul.f32 -0.2, %v683_v12 }
 0x1ae   : > { %v1396_v18 = vpop.eup %1395  ;;  %883 = vst.msk [vmem:[%s1810_s19 + $0x10] sm:$0xff] %vm752_vm1, %v1394_v14  ;;  %1415 = vpow2.f32 %v811_v8  ;;  %v857_v23 = vmul.f32 1.442695, %v837_v17  ;;  %v921_v25 = vmul.f32 1.442695, %v901_v19 }
 0x1af   : > { %v1398_v20 = vpop.eup %1397  ;;  %947 = vst.msk [vmem:[%s1818_s24 + $0x10] sm:$0xff] %vm752_vm1, %v1396_v18  ;;  %1417 = vpow2.f32 %v744_v9  ;;  %v859_v21 = vmul.f32 1.442695, %v838_v15  ;;  %v923_v22 = vmul.f32 1.442695, %v902_v16  ;;  %v697_v27 = vpop.xlane.xlu0 %696 }
 0x1b0   : > { %v1400_v24 = vpop.eup %1399  ;;  %891 = vst.msk [vmem:[%s1810_s19 + $0x50] sm:$0xff] %vm752_vm1, %v1398_v20  ;;  %1419 = vpow2.f32 %v809_v11  ;;  %v699_v26 = vpop.xlane.xlu1 %698  ;;  %v845_v31 = vsub.f32 0.0, %v697_v27  ;;  %v909_v33 = vmul.f32 -0.2, %v697_v27 }
 0x1b1   : > { %v1402_v28 = vpop.eup %1401  ;;  %955 = vst.msk [vmem:[%s1818_s24 + $0x50] sm:$0xff] %vm752_vm1, %v1400_v24  ;;  %1421 = vpow2.f32 %v859_v21  ;;  %v846_v29 = vsub.f32 0.0, %v699_v26  ;;  %v910_v30 = vmul.f32 -0.2, %v699_v26 }
 0x1b2   : > { %v1404_v32 = vpop.eup %1403  ;;  %755 = vst.msk [vmem:[%s1796_s25 + $0x10] sm:$0xff] %vm752_vm1, %v1402_v28  ;;  %1423 = vpow2.f32 %v923_v22  ;;  %v873_v37 = vmul.f32 1.442695, %v845_v31  ;;  %v937_v39 = vmul.f32 1.442695, %v909_v33 }
 0x1b3   : > { %v1406_v34 = vpop.eup %1405  ;;  %819 = vst.msk [vmem:[%s1802_s13 + $0x10] sm:$0xff] %vm752_vm1, %v1404_v32  ;;  %1425 = vpow2.f32 %v857_v23  ;;  %v875_v35 = vmul.f32 1.442695, %v846_v29  ;;  %v939_v36 = vmul.f32 1.442695, %v910_v30  ;;  %v630_v41 = vpop.xlane.xlu0 %629 }
 0x1b4   : > { %v1408_v38 = vpop.eup %1407  ;;  %758 = vst.msk [vmem:[%s1796_s25 + $0x28] sm:$0xff] %vm752_vm1, %v1406_v34  ;;  %1427 = vpow2.f32 %v921_v25  ;;  %v632_v40 = vpop.xlane.xlu1 %631  ;;  %v710_v45 = vsub.f32 0.0, %v630_v41  ;;  %v775_v47 = vmul.f32 -0.2, %v630_v41 }
 0x1b5   : > { %v1410_v42 = vpop.eup %1409  ;;  %822 = vst.msk [vmem:[%s1802_s13 + $0x28] sm:$0xff] %vm752_vm1, %v1408_v38  ;;  %1429 = vpow2.f32 %v875_v35  ;;  %v711_v43 = vsub.f32 0.0, %v632_v40  ;;  %v776_v44 = vmul.f32 -0.2, %v632_v40 }
 0x1b6   : > { %v1412_v46 = vpop.eup %1411  ;;  %757 = vst.msk [vmem:[%s1796_s25 + $0x20] sm:$0xff] %vm752_vm1, %v1410_v42  ;;  %1431 = vpow2.f32 %v939_v36  ;;  %v732_v51 = vmul.f32 1.442695, %v710_v45  ;;  %v797_v53 = vmul.f32 1.442695, %v775_v47 }
 0x1b7   : > { %v1414_v48 = vpop.eup %1413  ;;  %821 = vst.msk [vmem:[%s1802_s13 + $0x20] sm:$0xff] %vm752_vm1, %v1412_v46  ;;  %1433 = vpow2.f32 %v873_v37  ;;  %v734_v49 = vmul.f32 1.442695, %v711_v43  ;;  %v799_v50 = vmul.f32 1.442695, %v776_v44  ;;  %v646_v55 = vpop.xlane.xlu0 %645 }
 0x1b8   : > { %v1416_v52 = vpop.eup %1415  ;;  %766 = vst.msk [vmem:[%s1796_s25 + $0x68] sm:$0xff] %vm752_vm1, %v1414_v48  ;;  %1435 = vpow2.f32 %v937_v39  ;;  %v648_v54 = vpop.xlane.xlu1 %647  ;;  %v718_v59 = vsub.f32 0.0, %v646_v55  ;;  %v783_v61 = vmul.f32 -0.2, %v646_v55 }
 0x1b9   : > { %v1418_v56 = vpop.eup %1417  ;;  %830 = vst.msk [vmem:[%s1802_s13 + $0x68] sm:$0xff] %vm752_vm1, %v1416_v52  ;;  %1437 = vpow2.f32 %v734_v49  ;;  %v719_v57 = vsub.f32 0.0, %v648_v54  ;;  %v784_v58 = vmul.f32 -0.2, %v648_v54 }
 0x1ba   : > { %v1420_v60 = vpop.eup %1419  ;;  %765 = vst.msk [vmem:[%s1796_s25 + $0x60] sm:$0xff] %vm752_vm1, %v1418_v56  ;;  %1439 = vpow2.f32 %v799_v50  ;;  %v748_v1 = vmul.f32 1.442695, %v718_v59  ;;  %v813_v3 = vmul.f32 1.442695, %v783_v61 }
 0x1bb   : > { %v1422_v62 = vpop.eup %1421  ;;  %829 = vst.msk [vmem:[%s1802_s13 + $0x60] sm:$0xff] %vm752_vm1, %v1420_v60  ;;  %1441 = vpow2.f32 %v732_v51  ;;  %v750_v63 = vmul.f32 1.442695, %v719_v57  ;;  %v815_v0 = vmul.f32 1.442695, %v784_v58  ;;  %v685_v5 = vpop.xlane.xlu0 %684 }
 0x1bc   : > { %v1424_v2 = vpop.eup %1423  ;;  %886 = vst.msk [vmem:[%s1810_s19 + $0x28] sm:$0xff] %vm752_vm1, %v1422_v62  ;;  %1443 = vpow2.f32 %v797_v53  ;;  %v687_v4 = vpop.xlane.xlu1 %686  ;;  %v839_v9 = vsub.f32 0.0, %v685_v5  ;;  %v903_v11 = vmul.f32 -0.2, %v685_v5 }
 0x1bd   : > { %v1426_v6 = vpop.eup %1425  ;;  %950 = vst.msk [vmem:[%s1818_s24 + $0x28] sm:$0xff] %vm752_vm1, %v1424_v2  ;;  %1445 = vpow2.f32 %v750_v63  ;;  %v840_v7 = vsub.f32 0.0, %v687_v4  ;;  %v904_v8 = vmul.f32 -0.2, %v687_v4 }
 0x1be   : > { %v1428_v10 = vpop.eup %1427  ;;  %885 = vst.msk [vmem:[%s1810_s19 + $0x20] sm:$0xff] %vm752_vm1, %v1426_v6  ;;  %1447 = vpow2.f32 %v815_v0  ;;  %v861_v15 = vmul.f32 1.442695, %v839_v9  ;;  %v925_v17 = vmul.f32 1.442695, %v903_v11 }
 0x1bf   : > { %v1430_v12 = vpop.eup %1429  ;;  %949 = vst.msk [vmem:[%s1818_s24 + $0x20] sm:$0xff] %vm752_vm1, %v1428_v10  ;;  %1449 = vpow2.f32 %v748_v1  ;;  %v863_v13 = vmul.f32 1.442695, %v840_v7  ;;  %v927_v14 = vmul.f32 1.442695, %v904_v8  ;;  %v701_v19 = vpop.xlane.xlu0 %700 }
 0x1c0   : > { %v1432_v16 = vpop.eup %1431  ;;  %894 = vst.msk [vmem:[%s1810_s19 + $0x68] sm:$0xff] %vm752_vm1, %v1430_v12  ;;  %1451 = vpow2.f32 %v813_v3  ;;  %v703_v18 = vpop.xlane.xlu1 %702  ;;  %v847_v23 = vsub.f32 0.0, %v701_v19  ;;  %v911_v25 = vmul.f32 -0.2, %v701_v19 }
 0x1c1   : > { %v1434_v20 = vpop.eup %1433  ;;  %958 = vst.msk [vmem:[%s1818_s24 + $0x68] sm:$0xff] %vm752_vm1, %v1432_v16  ;;  %1453 = vpow2.f32 %v863_v13  ;;  %v848_v21 = vsub.f32 0.0, %v703_v18  ;;  %v912_v22 = vmul.f32 -0.2, %v703_v18 }
 0x1c2   : > { %v1436_v24 = vpop.eup %1435  ;;  %893 = vst.msk [vmem:[%s1810_s19 + $0x60] sm:$0xff] %vm752_vm1, %v1434_v20  ;;  %1455 = vpow2.f32 %v927_v14  ;;  %v877_v29 = vmul.f32 1.442695, %v847_v23  ;;  %v941_v31 = vmul.f32 1.442695, %v911_v25 }
 0x1c3   : > { %v1438_v26 = vpop.eup %1437  ;;  %957 = vst.msk [vmem:[%s1818_s24 + $0x60] sm:$0xff] %vm752_vm1, %v1436_v24  ;;  %1457 = vpow2.f32 %v861_v15  ;;  %v879_v27 = vmul.f32 1.442695, %v848_v21  ;;  %v943_v28 = vmul.f32 1.442695, %v912_v22 }
 0x1c4   : > { %v1440_v30 = vpop.eup %1439  ;;  %760 = vst.msk [vmem:[%s1796_s25 + $0x38] sm:$0xff] %vm752_vm1, %v1438_v26  ;;  %1459 = vpow2.f32 %v925_v17 }
 0x1c5   : > { %v1442_v32 = vpop.eup %1441  ;;  %824 = vst.msk [vmem:[%s1802_s13 + $0x38] sm:$0xff] %vm752_vm1, %v1440_v30  ;;  %1461 = vpow2.f32 %v879_v27 }
 0x1c6   : > { %v1444_v33 = vpop.eup %1443  ;;  %759 = vst.msk [vmem:[%s1796_s25 + $0x30] sm:$0xff] %vm752_vm1, %v1442_v32  ;;  %1463 = vpow2.f32 %v943_v28 }
 0x1c7   : > { %v1446_v34 = vpop.eup %1445  ;;  %823 = vst.msk [vmem:[%s1802_s13 + $0x30] sm:$0xff] %vm752_vm1, %v1444_v33  ;;  %1465 = vpow2.f32 %v877_v29 }
 0x1c8   : > { %v1448_v35 = vpop.eup %1447  ;;  %768 = vst.msk [vmem:[%s1796_s25 + $0x78] sm:$0xff] %vm752_vm1, %v1446_v34  ;;  %1467 = vpow2.f32 %v941_v31 }
 0x1c9   : > { %v1450_v36 = vpop.eup %1449  ;;  %832 = vst.msk [vmem:[%s1802_s13 + $0x78] sm:$0xff] %vm752_vm1, %v1448_v35 }
 0x1ca   : > { %v1452_v37 = vpop.eup %1451  ;;  %767 = vst.msk [vmem:[%s1796_s25 + $0x70] sm:$0xff] %vm752_vm1, %v1450_v36 }
 0x1cb   : > { %v1454_v38 = vpop.eup %1453  ;;  %831 = vst.msk [vmem:[%s1802_s13 + $0x70] sm:$0xff] %vm752_vm1, %v1452_v37 }
 0x1cc   : > { %v1456_v39 = vpop.eup %1455  ;;  %888 = vst.msk [vmem:[%s1810_s19 + $0x38] sm:$0xff] %vm752_vm1, %v1454_v38 }
 0x1cd   : > { %v1458_v40 = vpop.eup %1457  ;;  %952 = vst.msk [vmem:[%s1818_s24 + $0x38] sm:$0xff] %vm752_vm1, %v1456_v39 }
 0x1ce   : > { %v1460_v41 = vpop.eup %1459  ;;  %887 = vst.msk [vmem:[%s1810_s19 + $0x30] sm:$0xff] %vm752_vm1, %v1458_v40 }
 0x1cf   : > { %v1462_v42 = vpop.eup %1461  ;;  %951 = vst.msk [vmem:[%s1818_s24 + $0x30] sm:$0xff] %vm752_vm1, %v1460_v41 }
 0x1d0   : > { %v1464_v43 = vpop.eup %1463  ;;  %896 = vst.msk [vmem:[%s1810_s19 + $0x78] sm:$0xff] %vm752_vm1, %v1462_v42 }
 0x1d1   : > { %v1466_v44 = vpop.eup %1465  ;;  %960 = vst.msk [vmem:[%s1818_s24 + $0x78] sm:$0xff] %vm752_vm1, %v1464_v43 }
 0x1d2   : > { %v1468_v45 = vpop.eup %1467  ;;  %895 = vst.msk [vmem:[%s1810_s19 + $0x70] sm:$0xff] %vm752_vm1, %v1466_v44 }
 0x1d3   : > { %959 = vst.msk [vmem:[%s1818_s24 + $0x70] sm:$0xff] %vm752_vm1, %v1468_v45 }
 0x1d4 PF: > { %p1306_p5 = scmp.ge.s32.totalorder %s1531_s30, 2  ;;  %s1026_s17 = sand.u32 1, %s1519_s27  }
 0x1d5   : > { %s1027_s10 = scalar_lea.sflag [#allocation3], %s1026_s17 }
 0x1d6   : > { %p1303_p1 = pnand %p1306_p5, %p1623_p6 }
 0x1d8   : > { %1514 = dma.done.wait (!%p1303_p1), %s1027_s10, 2048  }
 0x1d9   : > { %1516 = vsyncadd (!%p1303_p1), %s1027_s10, 4294965248  ;;  %p19_p2 = scmp.ge.s32.totalorder %s1606_s11, 4   ;;  %s1972_s27 = smov %s1523_s28 }
 0x1da   : > { %s1973_s28 = smov %s1527_s29  ;;  %s1974_s29 = smov %s1617_s14 }
 0x1db   : > { %s1975_s30 = smov %s1606_s11  ;;  %21 = sbr.rel (!%p19_p2) target bundleno = 3 (0x3), region = 119 }
 0x1e2   :  { %1064 = vsyncpa [#allocation3], 1 }
 0x1e3   :  { %1066 = vsyncpa [#allocation3 + $0x1], 1 }

</bundles_post_ra>
